<compile_context>
chip_gen: v6e
topology: v6e:2x2x1
jax: 0.10.0
libtpu: 0.0.40
codegen_flags: <defaults>
</compile_context>

<pallas_src>
import math

import numpy as np
import jax
import jax.numpy as jnp
from jax import lax
from jax.experimental import pallas as pl
from jax.experimental.pallas import tpu as pltpu


def _round8(n):
    return ((n + 7) // 8) * 8


def init_params(key, embedding_dim, n_layer):
    """PyTorch-Linear-style init U(-1/sqrt(fan_in), 1/sqrt(fan_in)).

    Weights are kept in PyTorch's native (out, in) layout, biases are (out,).
    Layers: mem_layer, fc_0 .. fc_{n_layer-2} (each followed by sigmoid),
    final_layer (last -> 2) followed by softmax.
    """
    input_size = embedding_dim * 2
    dims = [(input_size, input_size)]                 # mem_layer
    last = input_size
    for _ in range(n_layer - 1):                      # fc stack
        out_dim = int(last / 4)
        assert out_dim >= 1, (
            "hidden width collapsed to 0; n_layer too large for embedding_dim")
        dims.append((last, out_dim))
        last = out_dim
    dims.append((last, 2))                            # final_layer
    params = []
    for fan_in, fan_out in dims:
        key, kw, kb = jax.random.split(key, 3)
        bound = 1.0 / math.sqrt(fan_in)
        w = jax.random.uniform(kw, (fan_out, fan_in), jnp.float32, -bound, bound)
        b = jax.random.uniform(kb, (fan_out,), jnp.float32, -bound, bound)
        params.append((w, b))
    return params


def pack_params(params):
    """Fold the final 2-way softmax into a logit-diff row and pack everything
    (weights in (out, in) layout + biases as columns) into one zero-padded
    f32 buffer of shape (rows, lane_w). Returns static slicing metadata."""
    w_fin = np.asarray(params[-1][0], np.float32)          # (2, last)
    b_fin = np.asarray(params[-1][1], np.float32)          # (2,)
    w_diff = (w_fin[0] - w_fin[1])[None, :]                # (1, last)
    b_diff = np.asarray([b_fin[0] - b_fin[1]], np.float32)

    layers = [(np.asarray(w, np.float32), np.asarray(b, np.float32))
              for (w, b) in params[:-1]] + [(w_diff, b_diff)]

    lane_w = max(w.shape[1] for w, _ in layers)            # = 2 * embedding_dim
    max_out = max(w.shape[0] for w, _ in layers)

    blocks, row_offsets, shapes = [], [], []
    r = 0
    for w, _ in layers:
        out_dim, in_dim = w.shape
        pad_rows = _round8(out_dim)
        blk = np.zeros((pad_rows, lane_w), np.float32)
        blk[:out_dim, :in_dim] = w
        blocks.append(blk)
        row_offsets.append(r)
        shapes.append((out_dim, in_dim))
        r += pad_rows

    # one bias block: column j holds the bias vector of logical layer j
    bias_blk = np.zeros((_round8(max_out), lane_w), np.float32)
    for j, (w, b) in enumerate(layers):
        bias_blk[:w.shape[0], j] = b
    bias_offset = r
    blocks.append(bias_blk)

    packed = jnp.asarray(np.concatenate(blocks, axis=0))
    return packed, tuple(row_offsets), bias_offset, tuple(shapes)


def make_recmam_kernel(d_emb, shapes, row_offsets, bias_offset):
    """shapes[0] = mem layer (2D, 2D); shapes[1:-1] = fc layers (out, in);
    shapes[-1] = folded final layer (1, last)."""
    n = len(shapes)
    max_out = max(s[0] for s in shapes)
    nt_dims = (((1,), (1,)), ((), ()))      # contract last dims: W @ X^T

    def kernel(x1_ref, x2_ref, p_ref, out_ref):
        in_size = shapes[0][0]                                  # 2 * d_emb
        r0 = row_offsets[0]
        w_mem = p_ref[r0:r0 + in_size, :]                       # (2D, lane_w)
        biases = p_ref[bias_offset:bias_offset + max_out, :]    # (max_out, lane_w)

        # mem_layer: h = W_mem @ [x1; x2]^T + b   -> (2D, TB), batch on lanes
        h = lax.dot_general(w_mem[:, 0:d_emb], x1_ref[...], nt_dims,
                            preferred_element_type=jnp.float32)
        h = h + lax.dot_general(w_mem[:, d_emb:2 * d_emb], x2_ref[...], nt_dims,
                                preferred_element_type=jnp.float32)
        h = h + biases[0:in_size, 0:1]

        # fc stack: Linear -> sigmoid (sigmoid runs on the otherwise-idle EUP)
        for j in range(1, n - 1):
            out_dim, in_dim = shapes[j]
            r = row_offsets[j]
            w = p_ref[r:r + out_dim, :][:, 0:in_dim]            # (out, in)
            h = jnp.dot(w, h, preferred_element_type=jnp.float32)
            h = h + biases[0:out_dim, j:j + 1]
            h = jax.nn.sigmoid(h)

        # folded final layer: softmax([z0, z1])[0] == sigmoid(z0 - z1)
        out_dim, in_dim = shapes[-1]                            # (1, last)
        r = row_offsets[-1]
        w_diff = p_ref[r:r + out_dim, :][:, 0:in_dim]
        logit = jnp.dot(w_diff, h, preferred_element_type=jnp.float32)
        logit = logit + biases[0:1, (n - 1):n]
        out_ref[...] = jax.nn.sigmoid(logit).astype(out_ref.dtype)

    return kernel


def make_recmam_forward(params):
    """Build the fused forward: forward(x1, x2) -> softmax class-0 prob (batch,)."""
    packed, row_offsets, bias_offset, shapes = pack_params(params)
    d_emb = shapes[0][1] // 2
    kernel = make_recmam_kernel(d_emb, shapes, row_offsets, bias_offset)

    def forward(x1, x2):
        x1 = x1.astype(jnp.float32)
        x2 = x2.astype(jnp.float32)
        batch, d = x1.shape
        assert d == d_emb and x2.shape == x1.shape

        # batch tile: full batch for small inputs, (8,128)-aligned tiles once
        # batch is large enough to amortize the ~0.35us/step overhead.
        if batch % 512 == 0 and batch > 512:
            tb = 512
        elif batch % 256 == 0 and batch > 256:
            tb = 256
        else:
            tb = batch
        grid = (batch // tb,)

        out = pl.pallas_call(
            kernel,
            out_shape=jax.ShapeDtypeStruct((1, batch), jnp.float32),
            grid_spec=pltpu.PrefetchScalarGridSpec(
                num_scalar_prefetch=0,
                grid=grid,
                in_specs=[
                    pl.BlockSpec((tb, d_emb), lambda i: (i, 0)),
                    pl.BlockSpec((tb, d_emb), lambda i: (i, 0)),
                    # constant block index -> the packed params are DMA'd once
                    pl.BlockSpec(packed.shape, lambda i: (0, 0)),
                ],
                out_specs=pl.BlockSpec((1, tb), lambda i: (0, i)),
            ),
            compiler_params=pltpu.CompilerParams(
                dimension_semantics=("parallel",)),
        )(x1, x2, packed)
        # equivalent of the original `return out[:, 0]`
        return out[0]

    return forward


def recmam_reference(x1, x2, params):
    """Pure-JAX reference matching the PyTorch module exactly."""
    x = jnp.concatenate([x1, x2], axis=1).astype(jnp.float32)
    w, b = params[0]
    h = x @ w.T + b                       # mem_layer (no activation)
    for w, b in params[1:-1]:
        h = jax.nn.sigmoid(h @ w.T + b)   # fc: Linear -> sigmoid
    w, b = params[-1]
    z = h @ w.T + b                       # final Linear(last, 2)
    return jax.nn.softmax(z, axis=1)[:, 0]


if __name__ == "__main__":
    embedding_dim = 32     # -> input_size = 64
    n_layer = 3            # fc: 64->16 (sigmoid), 16->4 (sigmoid); final: 4->2 softmax
    batch = 8

    key = jax.random.PRNGKey(0)
    kx1, kx2, kp = jax.random.split(key, 3)
    x1 = jax.random.normal(kx1, (batch, embedding_dim), jnp.float32)
    x2 = jax.random.normal(kx2, (batch, embedding_dim), jnp.float32)
    params = init_params(kp, embedding_dim, n_layer)

    forward = make_recmam_forward(params)
    out = jax.block_until_ready(forward(x1, x2))

    assert out.shape == (batch,), out.shape
    assert bool(jnp.all(jnp.isfinite(out)))
    # softmax class-0 probabilities must lie in (0, 1)
    assert bool(jnp.all((out > 0.0) & (out < 1.0)))

    ref = recmam_reference(x1, x2, params)
    max_err = float(jnp.max(jnp.abs(out - ref)))
    assert max_err < 5e-3, max_err

    print("KERNEL_OK")
</pallas_src>

<mosaic_0001>
module attributes {stable_mosaic.version = 11 : i64} {
  func.func @kernel(%arg0: i32, %arg1: memref<8x32xf32, #tpu.memory_space<vmem>>, %arg2: memref<8x32xf32, #tpu.memory_space<vmem>>, %arg3: memref<160x64xf32, #tpu.memory_space<vmem>>, %arg4: memref<1x8xf32, #tpu.memory_space<vmem>>) attributes {dimension_semantics = [#tpu.dimension_semantics<parallel>], iteration_bounds = array<i64: 1>, scalar_prefetch = 0 : i64, scratch_operands = 0 : i64, tpu.core_type = #tpu.core_type<tc>, window_params = [{transform_indices = @transform_0, window_bounds = array<i64: 8, 32>}, {transform_indices = @transform_1, window_bounds = array<i64: 8, 32>}, {pipeline_mode = #tpu.pipeline_mode<synchronous>, transform_indices = @transform_2, window_bounds = array<i64: 160, 64>}, {transform_indices = @transform_3, window_bounds = array<i64: 1, 8>}]} {
    %c0 = arith.constant 0 : index
    %c0_0 = arith.constant 0 : index
    %0 = vector.load %arg3[%c0, %c0_0] : memref<160x64xf32, #tpu.memory_space<vmem>>, vector<64x64xf32>
    %c96 = arith.constant 96 : index
    %c0_1 = arith.constant 0 : index
    %1 = vector.load %arg3[%c96, %c0_1] : memref<160x64xf32, #tpu.memory_space<vmem>>, vector<64x64xf32>
    %2 = vector.extract_strided_slice %0 {offsets = [0, 0], sizes = [64, 32], strides = [1, 1]} : vector<64x64xf32> to vector<64x32xf32>
    %c0_2 = arith.constant 0 : index
    %c0_3 = arith.constant 0 : index
    %3 = vector.load %arg1[%c0_2, %c0_3] : memref<8x32xf32, #tpu.memory_space<vmem>>, vector<8x32xf32>
    %cst = arith.constant dense<0.000000e+00> : vector<64x8xf32>
    %4 = tpu.matmul %2, %3, %cst {dimension_numbers = #tpu.dot_dimension_numbers<[1], [1], [0], [0], [0, 0, 1, 0], [], []>} : vector<64x32xf32>, vector<8x32xf32>, vector<64x8xf32> -> vector<64x8xf32>
    %5 = vector.extract_strided_slice %0 {offsets = [0, 32], sizes = [64, 32], strides = [1, 1]} : vector<64x64xf32> to vector<64x32xf32>
    %c0_4 = arith.constant 0 : index
    %c0_5 = arith.constant 0 : index
    %6 = vector.load %arg2[%c0_4, %c0_5] : memref<8x32xf32, #tpu.memory_space<vmem>>, vector<8x32xf32>
    %cst_6 = arith.constant dense<0.000000e+00> : vector<64x8xf32>
    %7 = tpu.matmul %5, %6, %cst_6 {dimension_numbers = #tpu.dot_dimension_numbers<[1], [1], [0], [0], [0, 0, 1, 0], [], []>} : vector<64x32xf32>, vector<8x32xf32>, vector<64x8xf32> -> vector<64x8xf32>
    %8 = arith.addf %4, %7 : vector<64x8xf32>
    %9 = vector.extract_strided_slice %1 {offsets = [0, 0], sizes = [64, 1], strides = [1, 1]} : vector<64x64xf32> to vector<64x1xf32>
    %10 = vector.broadcast %9 : vector<64x1xf32> to vector<64x8xf32>
    %11 = arith.addf %8, %10 : vector<64x8xf32>
    %c64 = arith.constant 64 : index
    %c0_7 = arith.constant 0 : index
    %12 = vector.load %arg3[%c64, %c0_7] : memref<160x64xf32, #tpu.memory_space<vmem>>, vector<16x64xf32>
    %cst_8 = arith.constant dense<0.000000e+00> : vector<16x8xf32>
    %13 = tpu.matmul %12, %11, %cst_8 {dimension_numbers = #tpu.dot_dimension_numbers<[1], [0], [0], [1], [0, 0, 1, 1], [], []>} : vector<16x64xf32>, vector<64x8xf32>, vector<16x8xf32> -> vector<16x8xf32>
    %14 = vector.extract_strided_slice %1 {offsets = [0, 1], sizes = [16, 1], strides = [1, 1]} : vector<64x64xf32> to vector<16x1xf32>
    %15 = vector.broadcast %14 : vector<16x1xf32> to vector<16x8xf32>
    %16 = arith.addf %13, %15 : vector<16x8xf32>
    %17 = arith.negf %16 : vector<16x8xf32>
    %18 = math.exp %17 : vector<16x8xf32>
    %cst_9 = arith.constant 1.000000e+00 : f32
    %19 = vector.broadcast %cst_9 : f32 to vector<16x8xf32>
    %20 = arith.addf %19, %18 : vector<16x8xf32>
    %21 = arith.divf %19, %20 : vector<16x8xf32>
    %c80 = arith.constant 80 : index
    %c0_10 = arith.constant 0 : index
    %22 = vector.load %arg3[%c80, %c0_10] : memref<160x64xf32, #tpu.memory_space<vmem>>, vector<4x64xf32>
    %23 = vector.extract_strided_slice %22 {offsets = [0, 0], sizes = [4, 16], strides = [1, 1]} : vector<4x64xf32> to vector<4x16xf32>
    %cst_11 = arith.constant dense<0.000000e+00> : vector<4x8xf32>
    %24 = tpu.matmul %23, %21, %cst_11 {dimension_numbers = #tpu.dot_dimension_numbers<[1], [0], [0], [1], [0, 0, 1, 1], [], []>} : vector<4x16xf32>, vector<16x8xf32>, vector<4x8xf32> -> vector<4x8xf32>
    %25 = vector.extract_strided_slice %1 {offsets = [0, 2], sizes = [4, 1], strides = [1, 1]} : vector<64x64xf32> to vector<4x1xf32>
    %26 = vector.broadcast %25 : vector<4x1xf32> to vector<4x8xf32>
    %27 = arith.addf %24, %26 : vector<4x8xf32>
    %28 = arith.negf %27 : vector<4x8xf32>
    %29 = math.exp %28 : vector<4x8xf32>
    %cst_12 = arith.constant 1.000000e+00 : f32
    %30 = vector.broadcast %cst_12 : f32 to vector<4x8xf32>
    %31 = arith.addf %30, %29 : vector<4x8xf32>
    %32 = arith.divf %30, %31 : vector<4x8xf32>
    %c88 = arith.constant 88 : index
    %c0_13 = arith.constant 0 : index
    %33 = vector.load %arg3[%c88, %c0_13] : memref<160x64xf32, #tpu.memory_space<vmem>>, vector<1x64xf32>
    %34 = vector.extract_strided_slice %33 {offsets = [0, 0], sizes = [1, 4], strides = [1, 1]} : vector<1x64xf32> to vector<1x4xf32>
    %cst_14 = arith.constant dense<0.000000e+00> : vector<1x8xf32>
    %35 = tpu.matmul %34, %32, %cst_14 {dimension_numbers = #tpu.dot_dimension_numbers<[1], [0], [0], [1], [0, 0, 1, 1], [], []>} : vector<1x4xf32>, vector<4x8xf32>, vector<1x8xf32> -> vector<1x8xf32>
    %36 = vector.extract_strided_slice %1 {offsets = [0, 3], sizes = [1, 1], strides = [1, 1]} : vector<64x64xf32> to vector<1x1xf32>
    %37 = vector.broadcast %36 : vector<1x1xf32> to vector<1x8xf32>
    %38 = arith.addf %35, %37 : vector<1x8xf32>
    %39 = arith.negf %38 : vector<1x8xf32>
    %40 = math.exp %39 : vector<1x8xf32>
    %cst_15 = arith.constant 1.000000e+00 : f32
    %41 = vector.broadcast %cst_15 : f32 to vector<1x8xf32>
    %42 = arith.addf %41, %40 : vector<1x8xf32>
    %43 = arith.divf %41, %42 : vector<1x8xf32>
    %c0_16 = arith.constant 0 : index
    %c0_17 = arith.constant 0 : index
    %44 = vector.load %arg4[%c0_16, %c0_17] : memref<1x8xf32, #tpu.memory_space<vmem>>, vector<1x8xf32>
    tpu.vector_store %arg4[%c0_16, %c0_17], %43 {strides = array<i32>} : memref<1x8xf32, #tpu.memory_space<vmem>>, vector<1x8xf32>,
    return
  }
  func.func @transform_0(%arg0: i32) -> (i32, i32) {
    %c0_i32 = arith.constant 0 : i32
    %c0_i32_0 = arith.constant 0 : i32
    return %arg0, %c0_i32 : i32, i32
  }
  func.func @transform_1(%arg0: i32) -> (i32, i32) {
    %c0_i32 = arith.constant 0 : i32
    %c0_i32_0 = arith.constant 0 : i32
    return %arg0, %c0_i32 : i32, i32
  }
  func.func @transform_2(%arg0: i32) -> (i32, i32) {
    %c0_i32 = arith.constant 0 : i32
    %c0_i32_0 = arith.constant 0 : i32
    %c0_i32_1 = arith.constant 0 : i32
    return %c0_i32, %c0_i32_0 : i32, i32
  }
  func.func @transform_3(%arg0: i32) -> (i32, i32) {
    %c0_i32 = arith.constant 0 : i32
    %c0_i32_0 = arith.constant 0 : i32
    return %c0_i32, %arg0 : i32, i32
  }
}

</mosaic_0001>

<bundles_post_ra>
// kernel: tpu_custom_call.1
= control target key start
LH: loop header
LB: loop body
LE: loop exit
PB: predicated region body
PF: predicated region fallthrough
CT: control target
= control target key end

     0   :  { %s820_s16 = smov 96   ;;  %vm57_vm0 = vcmask 261120   ;;  %s945_s0 = inlined_call_operand.vmem [shape: f32[8,32], index: 0, kind: input, shape index: {}]   ;;  %s946_s1 = inlined_call_operand.vmem [shape: f32[8,32], index: 1, kind: input, shape index: {}]   ;;  %s947_s2 = inlined_call_operand.vmem [shape: f32[160,64], index: 2, kind: input, shape index: {}]   ;;  %s948_s3 = inlined_call_operand.hbm [shape: f32[1,8], index: 3, kind: output, shape index: {}]  }
   0x1   :  { %v15_v0 = vld [vmem:[%s947_s2] sm:$0xff]  ;;  %v17_v1 = vld [vmem:[%s947_s2 + $0x10] sm:$0xff]  ;;  %v16_v2 = vld [vmem:[%s947_s2 + $0x8] sm:$0xff] }
   0x2   :  { %41 = vrot.lane.b32.xlu0 %v15_v0, %s820_s16  ;;  %45 = vrot.lane.b32.xlu1 %v17_v1, %s820_s16  ;;  %v18_v3 = vld [vmem:[%s947_s2 + $0x18] sm:$0xff]  ;;  %v31_v4 = vld [vmem:[%s945_s0] sm:$0xff] }
   0x3   :  { %724 = vmatprep.mubr.msk.f32.mxu1 %vm57_vm0, %v15_v0  ;;  %v32_v5 = vld [vmem:[%s946_s1] sm:$0xff] }
   0x4   :  { %8 = vsyncpa [#allocation3], 0  ;;  %722 = vmatprep.subr.msk.mxu1 %vm57_vm0, %v31_v4  ;;  %708 = vmatprep.subr.msk.mxu0 %vm57_vm0, %v32_v5  ;;  %v19_v6 = vld [vmem:[%s947_s2 + $0x20] sm:$0xff]  ;;  %v20_v7 = vld [vmem:[%s947_s2 + $0x28] sm:$0xff]  ;;  %v821_v8 = vmov 0   ;;  %vm364_vm1 = vcmask 523264  }
   0x5   :  { %723 = vmatpush3.xpose.msk.msra.mxu1 %vm57_vm0, %v31_v4  ;;  %709 = vmatpush3.xpose.msk.msra.mxu0 %vm57_vm0, %v32_v5  ;;  %v21_v9 = vld [vmem:[%s947_s2 + $0x30] sm:$0xff]  ;;  %v22_v10 = vld [vmem:[%s947_s2 + $0x38] sm:$0xff]  ;;  %v28_v13 = vld [vmem:[%s947_s2 + $0x88] sm:$0xff]  ;;  %v822_v28 = vmov 1   ;;  %vm824_vm2 = vmmov 0   ;;  %vm463_vm3 = vcmask 130048  }
   0x6   :  { %43 = vrot.lane.b32.xlu0 %v16_v2, %s820_s16  ;;  %47 = vrot.lane.b32.xlu1 %v18_v3, %s820_s16  ;;  %v29_v11 = vld [vmem:[%s947_s2 + $0x90] sm:$0xff]  ;;  %v30_v12 = vld [vmem:[%s947_s2 + $0x98] sm:$0xff]  ;;  %vm552_vm4 = vcmask 1043456   ;;  %vm548_vm5 = vcmask 31744   ;;  %s827_s28 = smov [#allocation2]   ;;  %vm632_vm6 = vcmask 57344  }
   0x7   :  { %776 = vset.pattern.permute.xlu1 %v821_v8  ;;  %775 = vset.pattern.permute.xlu0 %v821_v8  ;;  %v27_v14 = vld [vmem:[%s947_s2 + $0x80] sm:$0xff]  ;;  %v26_v15 = vld [vmem:[%s947_s2 + $0x78] sm:$0xff]  ;;  %v25_v16 = vld [vmem:[%s947_s2 + $0x70] sm:$0xff]  ;;  %s640_s0 = sshll.u32 %s827_s28, 4  ;;  %s641_s0 = int_to_ptr.vmem [resolvable:$true] %s640_s0 }
   0x8   :  { %725 = vmatmul.mubr.msk.f32.vlgmr.msra.gmra.mxu1 %vm57_vm0, %v16_v2  ;;  %v24_v17 = vld [vmem:[%s947_s2 + $0x68] sm:$0xff]  ;;  %v914_v18 = vld [vmem:[%s947_s2 + $0x60] sm:$0xff]  ;;  %s802_s1 = scalar_lea.vmem %s641_s0, 32  ;;  %p803_p1 = scmp.lt.s32.totalorder %s641_s0, %s641_s0 }
   0x9   :  { %727 = vmatprep.mubr.msk.f32.mxu1 %vm57_vm0, %v17_v1  ;;  %v354_v27 = vld [vmem:[%s947_s2 + $0x40] sm:$0xff]  ;;  %v355_v5 = vld [vmem:[%s947_s2 + $0x48] sm:$0xff] }
   0xa   :  { %49 = vrot.lane.b32.xlu0 %v19_v6, %s820_s16  ;;  %51 = vrot.lane.b32.xlu1 %v20_v7, %s820_s16 }
   0xc   :  { %728 = vmatmul.mubr.msk.f32.gmra.mxu1 %vm57_vm0, %v18_v3 }
   0xd   :  { %730 = vmatprep.mubr.msk.f32.mxu1 %vm57_vm0, %v19_v6  ;;  %v823_v6 = vmov 0.0  }
   0xe   :  { %53 = vrot.lane.b32.xlu0 %v21_v9, %s820_s16  ;;  %55 = vrot.lane.b32.xlu1 %v22_v10, %s820_s16 }
   0xf   :  { %755 = vmatprep.subr.mxu1 %v823_v6 }
  0x10   :  { %731 = vmatmul.mubr.msk.f32.gmra.mxu1 %vm57_vm0, %v20_v7  ;;  %v825_v7 = vmov 2  }
  0x11   :  { %733 = vmatprep.mubr.msk.f32.mxu1 %vm57_vm0, %v21_v9 }
  0x12   :  { %338 = vperm.xlu1 %776, %v29_v11   ;;  %343 = vperm.xlu0 %775, %v30_v12  }
  0x14   :  { %734 = vmatmul.mubr.msk.f32.gmra.mxu1 %vm57_vm0, %v22_v10 }
  0x15   :  { %759 = vmatprep.mubr.msk.f32.mxu1 %vm824_vm2, %v823_v6 }
  0x16   :  { %333 = vperm.xlu1 %776, %v28_v13   ;;  %328 = vperm.xlu0 %775, %v27_v14  }
  0x1a   :  { %323 = vperm.xlu1 %776, %v26_v15   ;;  %318 = vperm.xlu0 %775, %v25_v16  }
  0x1e   :  { %313 = vperm.xlu1 %776, %v24_v17   ;;  %308 = vperm.xlu0 %775, %v914_v18  }
  0x22   :  { %777 = vset.pattern.permute.xlu1 %v822_v28  ;;  %778 = vset.pattern.permute.xlu0 %v822_v28 }
  0x23   :  { %361 = vperm.xlu1 %777, %v24_v17   ;;  %357 = vperm.xlu0 %778, %v914_v18  }
  0x27   :  { %779 = vset.pattern.permute.xlu1 %v825_v7 }
  0x28   :  { %460 = vperm.xlu1 %779, %v914_v18  }
  0x74   :  { %v42_v19 = vpop.permute.xlu0 %41  ;;  %v46_v20 = vpop.permute.xlu1 %45 }
  0x75   :  { %710 = vmatprep.mubr.msk.f32.mxu0 %vm57_vm0, %v42_v19 }
  0x78   :  { %v44_v21 = vpop.permute.xlu0 %43  ;;  %v48_v22 = vpop.permute.xlu1 %47 }
  0x79   :  { %711 = vmatmul.mubr.msk.f32.vlgmr.msra.gmra.mxu0 %vm57_vm0, %v44_v21 }
  0x7a   :  { %713 = vmatprep.mubr.msk.f32.mxu0 %vm57_vm0, %v46_v20 }
  0x7c   :  { %v50_v23 = vpop.permute.xlu0 %49  ;;  %v52_v24 = vpop.permute.xlu1 %51 }
  0x7d   :  { %714 = vmatmul.mubr.msk.f32.gmra.mxu0 %vm57_vm0, %v48_v22  ;;  %v458_v22 = vld [vmem:[%s947_s2 + $0x50] sm:$0xf] }
  0x7e   :  { %716 = vmatprep.mubr.msk.f32.mxu0 %vm57_vm0, %v50_v23 }
  0x80   :  { %v54_v25 = vpop.permute.xlu0 %53  ;;  %v56_v26 = vpop.permute.xlu1 %55 }
  0x81   :  { %717 = vmatmul.mubr.msk.f32.gmra.mxu0 %vm57_vm0, %v52_v24  ;;  %v826_v24 = vmov 3  }
  0x82   :  { %719 = vmatprep.mubr.msk.f32.mxu0 %vm57_vm0, %v54_v25  ;;  %780 = vset.pattern.permute.xlu1 %v826_v24 }
  0x83   :  { %781 = vset.pattern.permute.xlu0 %v826_v24  ;;  %545 = vperm.xlu1 %780, %v914_v18  }
  0x85   :  { %720 = vmatmul.mubr.msk.f32.gmra.mxu0 %vm57_vm0, %v56_v26 }
  0x86   :  { %752 = vmatprep.mubr.msk.f32.mxu0 %vm364_vm1, %v354_v27 }
  0x8d   :  { %v339_v37 = vpop.permute.xlu1 %338  ;;  %v344_v40 = vpop.permute.xlu0 %343 }
  0x91   :  { %v334_v44 = vpop.permute.xlu1 %333  ;;  %v329_v46 = vpop.permute.xlu0 %328 }
  0x95   :  { %v324_v55 = vpop.permute.xlu1 %323  ;;  %v319_v58 = vpop.permute.xlu0 %318 }
  0x99   :  { %v314_v63 = vpop.permute.xlu1 %313  ;;  %v309_v2 = vpop.permute.xlu0 %308 }
  0x9e   :  { %v362_v8 = vpop.permute.xlu1 %361  ;;  %v358_v10 = vpop.permute.xlu0 %357 }
  0xa3   :  { %v461_v25 = vpop.permute.xlu1 %460 }
  0xc8   :  { %v726_v29 = vpop.f32.mrf.mxu1 }
  0xca   :  { %v267_v30 = vpop.f32.mrf.mxu1 }
  0xcc   :  { %v729_v31 = vpop.f32.mrf.mxu1 }
  0xce   :  { %v277_v32 = vpop.f32.mrf.mxu1 }
  0xd0   :  { %v732_v35 = vpop.f32.mrf.mxu1 }
  0xd2   :  { %v287_v39 = vpop.f32.mrf.mxu1 }
  0xd4   :  { %v735_v43 = vpop.f32.mrf.mxu1 }
  0xd6   :  { %v297_v48 = vpop.f32.mrf.mxu1 }
 0x139   :  { %v712_v33 = vpop.f32.mrf.mxu0 }
 0x13a   :  { %v273_v61 = vadd.f32 %v726_v29, %v712_v33 }
 0x13b   :  { %v143_v34 = vpop.f32.mrf.mxu0 }
 0x13c   :  { %v268_v0 = vadd.f32 %v267_v30, %v143_v34  ;;  %v347_v3 = vadd.f32 %v314_v63, %v273_v61  ;;  %v546_v34 = vpop.permute.xlu1 %545 }
 0x13d   :  { %v715_v36 = vpop.f32.mrf.mxu0 }
 0x13e   :  { %v283_v56 = vadd.f32 %v729_v31, %v715_v36  ;;  %v346_v4 = vadd.f32 %v309_v2, %v268_v0 }
 0x13f   :  { %v153_v38 = vpop.f32.mrf.mxu0 }
 0x140   :  { %v278_v59 = vadd.f32 %v277_v32, %v153_v38  ;;  %v349_v62 = vadd.f32 %v324_v55, %v283_v56  ;;  %v543_v32 = vld [vmem:[%s947_s2 + $0x58] sm:$0x1]  ;;  %s798_s2 = scalar_lea.vmem %s641_s0, 16 }
 0x141   :  { %v718_v41 = vpop.f32.mrf.mxu0  ;;  %p799_p0 = scmp.ne.s32.totalorder %s641_s0, %s798_s2  ;;  %p804_p2 = scmp.lt.s32.totalorder %s802_s1, %s798_s2 }
 0x142   :  { %v293_v50 = vadd.f32 %v732_v35, %v718_v41  ;;  %v348_v1 = vadd.f32 %v319_v58, %v278_v59 }
 0x143   :  { %v163_v42 = vpop.f32.mrf.mxu0  ;;  %p805_p3 = por %p804_p2, %p803_p1 }
 0x144   :  { %v288_v53 = vadd.f32 %v287_v39, %v163_v42  ;;  %v351_v57 = vadd.f32 %v334_v44, %v293_v50 }
 0x145   :  { %v721_v45 = vpop.f32.mrf.mxu0  ;;  %p806_p4 = pnand %p805_p3, %p799_p0 }
 0x146   :  { %v303_v47 = vadd.f32 %v735_v43, %v721_v45  ;;  %v350_v60 = vadd.f32 %v329_v46, %v288_v53 }
 0x147   :  { %v173_v49 = vpop.f32.mrf.mxu0 }
 0x148   :  { %v353_v51 = vadd.f32 %v344_v40, %v303_v47  ;;  %v298_v52 = vadd.f32 %v297_v48, %v173_v49 }
 0x14a   :  { %v352_v54 = vadd.f32 %v339_v37, %v298_v52  ;;  %736 = vmatprep.subr.mxu0 %v353_v51 }
 0x14b   :  { %737 = vmatpush3.msra.mxu0 %v353_v51 }
 0x14c   :  { %738 = vmatprep.subr.mxu0 %v352_v54 }
 0x14d   :  { %739 = vmatpush3.msra.mxu0 %v352_v54 }
 0x14e   :  { %740 = vmatprep.subr.mxu0 %v351_v57 }
 0x14f   :  { %741 = vmatpush3.msra.mxu0 %v351_v57 }
 0x150   :  { %742 = vmatprep.subr.mxu0 %v350_v60 }
 0x151   :  { %743 = vmatpush3.msra.mxu0 %v350_v60 }
 0x152   :  { %744 = vmatprep.subr.mxu0 %v349_v62 }
 0x153   :  { %745 = vmatpush3.msra.mxu0 %v349_v62 }
 0x154   :  { %746 = vmatprep.subr.mxu0 %v348_v1 }
 0x155   :  { %747 = vmatpush3.msra.mxu0 %v348_v1 }
 0x156   :  { %748 = vmatprep.subr.mxu0 %v347_v3 }
 0x157   :  { %749 = vmatpush3.msra.mxu0 %v347_v3 }
 0x158   :  { %750 = vmatprep.subr.mxu0 %v346_v4 }
 0x159   :  { %751 = vmatpush3.msra.mxu0 %v346_v4 }
 0x15a   :  { %753 = vmatmul.mubr.msk.f32.vlgmr.msra.gmra.mxu0 %vm364_vm1, %v355_v5  ;;  %762 = vmatprep.subr.mxu0 %v823_v6 }
 0x15b   :  { %764 = vmatprep.mubr.msk.f32.mxu0 %vm824_vm2, %v823_v6 }
 0x21a   :  { %v754_v9 = vpop.f32.mrf.mxu0 }
 0x21b   :  { %v443_v11 = vadd.f32 %v754_v9, %v362_v8 }
 0x21c   :  { %v437_v12 = vpop.f32.mrf.mxu0 }
 0x21d   :  { %v669_v13 = vmul.f32 -1.442695, %v443_v11  ;;  %v438_v14 = vadd.f32 %v437_v12, %v358_v10 }
 0x21f   :  { %782 = vpow2.f32 %v669_v13  ;;  %v668_v15 = vmul.f32 -1.442695, %v438_v14 }
 0x221   :  { %784 = vpow2.f32 %v668_v15 }
 0x22c   :  { %v783_v16 = vpop.eup %782 }
 0x22d   :  { %v453_v17 = vadd.f32 1.0, %v783_v16 }
 0x22e   :  { %v785_v19 = vpop.eup %784 }
 0x22f   :  { %786 = vrcp.f32 %v453_v17  ;;  %v452_v20 = vadd.f32 1.0, %v785_v19 }
 0x231   :  { %788 = vrcp.f32 %v452_v20 }
 0x23c   :  { %v787_v21 = vpop.eup %786 }
 0x23d   :  { %756 = vmatpush3.msra.mxu1 %v787_v21 }
 0x23e   :  { %v789_v23 = vpop.eup %788  ;;  %757 = vmatprep.subr.mxu1 %v823_v6 }
 0x23f   :  { %758 = vmatpush3.msra.mxu1 %v789_v23 }
 0x240   :  { %760 = vmatmul.mubr.msk.f32.vlgmr.msra.gmra.mxu1 %vm463_vm3, %v458_v22 }
 0x300   :  { %v533_v26 = vpop.f32.mrf.mxu1 }
 0x301   :  { %v534_v27 = vadd.f32 %v533_v26, %v461_v25 }
 0x302   :  { %v761_v28 = vpop.f32.mrf.mxu1 }
 0x303   :  { %v671_v29 = vmul.f32 -1.442695, %v534_v27 }
 0x305   :  { %790 = vpow2.f32 %v671_v29 }
 0x312   :  { %v791_v30 = vpop.eup %790 }
 0x313   :  { %v540_v31 = vadd.f32 1.0, %v791_v30 }
 0x315   :  { %792 = vrcp.f32 %v540_v31 }
 0x322   :  { %v793_v33 = vpop.eup %792 }
 0x323   :  { %763 = vmatpush3.msk.msra.mxu0 %vm552_vm4, %v793_v33 }
 0x324   :  { %765 = vmatmul.mubr.msk.f32.vlgmr.msra.gmra.mxu0 %vm548_vm5, %v543_v32 }
 0x3e4   :  { %v622_v18 = vpop.f32.mrf.mxu0 }
 0x3e5   :  { %v623_v35 = vadd.f32 %v622_v18, %v546_v34 }
 0x3e6   :  { %v766_v36 = vpop.f32.mrf.mxu0 }
 0x3e7   :  { %v674_v37 = vmul.f32 -1.442695, %v623_v35 }
 0x3e9   :  { %794 = vpow2.f32 %v674_v37 }
 0x3f6   :  { %v795_v38 = vpop.eup %794 }
 0x3f7   :  { %v629_v39 = vadd.f32 1.0, %v795_v38 }
 0x3f9   :  { %796 = vrcp.f32 %v629_v39 }
 0x406   :  { %v797_v40 = vpop.eup %796 }
 0x407   :  { %633 = vst.msk [vmem:[#allocation2] sm:$0x1] %vm632_vm6, %v797_v40 }
 0x408   :  { %809 = shalt.err (!%p806_p4)
}
 0x409   :  { %643 = dma.vmem_to_hbm [thread:$0]  %s641_s0, 16, %s948_s3, [#allocation3]  }
 0x40a   :  { %818 = dma.done.wait [#allocation3], 16  }
 0x40b   :  { %819 = vsyncadd [#allocation3], 4294967280 }
 0x40c   :  { %647 = vsyncpa [#allocation3], 1 }

</bundles_post_ra>
